<compile_context>
chip_gen: v7x
topology: tpu7x:2x2x1
jax: 0.10.0
libtpu: 0.0.40
codegen_flags: <defaults>
</compile_context>

<pallas_src>
import functools

import jax
import jax.numpy as jnp
from jax.experimental import pallas as pl
from jax.experimental.pallas import tpu as pltpu

LEAKY_SLOPE = 0.01   # nn.LeakyReLU default
BN_EPS = 1e-5        # nn.BatchNorm1d default
# > v5e's 16 MiB default scoped VMEM, comfortably < v7x's 64 MiB physical.
_VMEM_LIMIT_BYTES = 48 * 1024 * 1024


def _leaky_relu(x):
    return jnp.where(x > 0, x, LEAKY_SLOPE * x)


def _elu(x):
    # F.elu, alpha=1 (min() keeps exp() finite in the untaken branch)
    return jnp.where(x > 0, x, jnp.exp(jnp.minimum(x, 0.0)) - 1.0)


def _round_up(x, m):
    return ((x + m - 1) // m) * m


def _pick_tile(n, tile_n):
    """Large node tiles; keep >=2 grid steps when possible so both v7x TCs get work."""
    rows = _round_up(max(n, 1), 8)
    tile = min(tile_n, rows)
    if pl.cdiv(n, tile) < 2 and rows >= 16:
        tile = _round_up(pl.cdiv(n, 2), 8)
    return tile


def _const_spec(shape):
    """Grid-invariant operand: single VMEM buffer (no pointless double-buffering)."""
    return pl.BlockSpec(shape, lambda i: (0, 0), pipeline_mode=pl.Buffered(1))


# ---------------------------------------------------------------------------
# Kernel 1: fused node projection (project_node) + per-node attention scores.
# Single matmul against [W_proj | w_att_dst | w_att_src]; single output slab.
# ---------------------------------------------------------------------------
def _node_project_kernel(h_ref, w_ref, b_ref, o_ref, *, compute_dtype):
    h = h_ref[...].astype(compute_dtype)
    o = jnp.dot(h, w_ref[...], preferred_element_type=jnp.float32) + b_ref[...]
    o_ref[...] = o.astype(o_ref.dtype)


def node_project_pallas(node_feats, w_cat, b_cat, *, tile_n, compute_dtype):
    N, D = node_feats.shape
    C = w_cat.shape[1]                      # G + 2  (proj features + dst/src scores)
    tile = _pick_tile(N, tile_n)
    grid = (pl.cdiv(N, tile),)              # no padding copies; ragged last block masked
    kernel = functools.partial(_node_project_kernel, compute_dtype=compute_dtype)
    return pl.pallas_call(
        kernel,
        out_shape=jax.ShapeDtypeStruct((N, C), node_feats.dtype),
        grid_spec=pltpu.PrefetchScalarGridSpec(
            num_scalar_prefetch=0,
            grid=grid,
            in_specs=[
                pl.BlockSpec((tile, D), lambda i: (i, 0)),   # node feats tile
                _const_spec((D, C)),                         # [W_proj | w_att_dst | w_att_src]
                _const_spec((1, C)),                         # [b_proj | 0 | 0]
            ],
            out_specs=pl.BlockSpec((tile, C), lambda i: (i, 0)),
        ),
        compiler_params=pltpu.CompilerParams(
            dimension_semantics=("parallel",),
            vmem_limit_bytes=_VMEM_LIMIT_BYTES),
    )(node_feats, w_cat, b_cat)


# ---------------------------------------------------------------------------
# Kernel 2: fused softmax-normalize + ELU + GRUCell + ReLU + BatchNorm (eval).
# Per-gate weights (vreg-aligned gate outputs); r/z fused over a single [x|h] matmul.
# ---------------------------------------------------------------------------
def _gru_bn_kernel(c_ref, d_ref, h_ref, wr_ref, wz_ref, win_ref, whn_ref,
                   br_ref, bz_ref, bin_ref, bhn_ref, scale_ref, shift_ref,
                   o_ref, xh_ref, *, compute_dtype):
    G = c_ref.shape[1]
    d = d_ref[...]
    inv = jnp.where(d > 0.0, 1.0 / d, 0.0)          # isolated dst nodes -> c = 0 (no NaN)
    x = _elu(c_ref[...] * inv)                       # softmax normalization fused on-chip
    h = h_ref[...]
    xc = x.astype(compute_dtype)
    hc = h.astype(compute_dtype)
    # Build [x | h] in VMEM scratch (guaranteed-lowerable concat via sub-slice stores).
    xh_ref[:, :G] = xc
    xh_ref[:, G:] = hc
    xh = xh_ref[...]
    # PyTorch GRUCell gate order: r, z, n
    r = jax.nn.sigmoid(
        jnp.dot(xh, wr_ref[...], preferred_element_type=jnp.float32) + br_ref[...])
    z = jax.nn.sigmoid(
        jnp.dot(xh, wz_ref[...], preferred_element_type=jnp.float32) + bz_ref[...])
    gin = jnp.dot(xc, win_ref[...], preferred_element_type=jnp.float32) + bin_ref[...]
    ghn = jnp.dot(hc, whn_ref[...], preferred_element_type=jnp.float32) + bhn_ref[...]
    n = jnp.tanh(gin + r * ghn)
    h_new = (1.0 - z) * n + z * h
    y = jnp.maximum(h_new, 0.0)                      # ReLU
    o_ref[...] = (y * scale_ref[...] + shift_ref[...]).astype(o_ref.dtype)   # BN (eval)


def gru_bn_pallas(c_un, denom, h, w_r, w_z, w_in, w_hn, b_r, b_z, b_in, b_hn,
                  bn_scale, bn_shift, *, tile_n, compute_dtype):
    N, D = h.shape
    G = c_un.shape[1]
    tile = _pick_tile(N, tile_n)
    grid = (pl.cdiv(N, tile),)
    kernel = functools.partial(_gru_bn_kernel, compute_dtype=compute_dtype)
    return pl.pallas_call(
        kernel,
        out_shape=jax.ShapeDtypeStruct((N, D), h.dtype),
        grid_spec=pltpu.PrefetchScalarGridSpec(
            num_scalar_prefetch=0,
            grid=grid,
            in_specs=[
                pl.BlockSpec((tile, G), lambda i: (i, 0)),   # unnormalized aggregated msgs
                pl.BlockSpec((tile, 1), lambda i: (i, 0)),   # edge-softmax denominator
                pl.BlockSpec((tile, D), lambda i: (i, 0)),   # node feats (GRU hidden)
                _const_spec((G + D, D)),                     # W_r over [x|h]
                _const_spec((G + D, D)),                     # W_z over [x|h]
                _const_spec((G, D)),                         # W_in
                _const_spec((D, D)),                         # W_hn
                _const_spec((1, D)),                         # b_r (= b_ir + b_hr)
                _const_spec((1, D)),                         # b_z
                _const_spec((1, D)),                         # b_in
                _const_spec((1, D)),                         # b_hn
                _const_spec((1, D)),                         # BN scale
                _const_spec((1, D)),                         # BN shift
            ],
            out_specs=pl.BlockSpec((tile, D), lambda i: (i, 0)),
            scratch_shapes=[pltpu.VMEM((tile, G + D), compute_dtype)],
        ),
        compiler_params=pltpu.CompilerParams(
            dimension_semantics=("parallel",),
            vmem_limit_bytes=_VMEM_LIMIT_BYTES),
    )(c_un, denom, h, w_r, w_z, w_in, w_hn, b_r, b_z, b_in, b_hn, bn_scale, bn_shift)


# ---------------------------------------------------------------------------
# Full forward (Pallas kernels + graph-structured glue).
# ---------------------------------------------------------------------------
@functools.partial(jax.jit, static_argnames=("tile_n", "compute_dtype"))
def gnn_layer_forward(node_feats, src_idx, dst_idx, params, *,
                      tile_n=1024, compute_dtype=jnp.float32):
    N, D = node_feats.shape
    G = params["w_proj"].shape[1]
    w_att = params["w_att"]                          # [2D, 1], rows = concat([h_dst, h_src])
    # Fold attention weights into the projection weight so kernel 1 is ONE matmul with ONE
    # lane-dense output slab and the [E, 2D] edge concat never exists:
    #   concat([h_dst, h_src]) @ w_att == h_dst @ w_att[:D] + h_src @ w_att[D:]
    w_cat = jnp.concatenate([params["w_proj"], w_att[:D], w_att[D:]], axis=1)   # (D, G+2)
    b_cat = jnp.concatenate(
        [params["b_proj"], jnp.zeros((1, 2), params["b_proj"].dtype)], axis=1)  # (1, G+2)
    if compute_dtype != jnp.float32:
        w_cat = w_cat.astype(compute_dtype)

    # Pallas kernel 1: fused project_node + per-node attention scores.
    proj = node_project_pallas(node_feats, w_cat, b_cat,
                               tile_n=tile_n, compute_dtype=compute_dtype)
    hv_proj = proj[:, :G]
    s_dst = proj[:, G]
    s_src = proj[:, G + 1]

    # Graph-structured glue (data-dependent gather/scatter).
    # TODO(synk): move edge_softmax + scatter-sum into a CSR (sorted-by-dst) Pallas kernel
    # with scalar-prefetched segment offsets; the XLA segment ops below remain the main
    # HBM-traffic / serialization bottleneck for large graphs.
    logits = _leaky_relu(s_dst[dst_idx] + s_src[src_idx] + params["b_att"])      # [E]
    lmax = jax.ops.segment_max(logits, dst_idx, num_segments=N)
    p = jnp.exp(logits - lmax[dst_idx])
    denom = jax.ops.segment_sum(p, dst_idx, num_segments=N)                      # [N]
    c_un = jax.ops.segment_sum(p[:, None] * hv_proj[src_idx], dst_idx,
                               num_segments=N)                                   # [N, G]

    # GRU weight packing: per-gate matrices (vreg-aligned gate outputs, no lane-crossing
    # slices); r/z gates share a single [x|h] matmul (doubled contraction depth).
    w_ih, w_hh = params["w_ih"], params["w_hh"]
    b_ih, b_hh = params["b_ih"], params["b_hh"]
    w_r = jnp.concatenate([w_ih[:, :D], w_hh[:, :D]], axis=0)                    # (G+D, D)
    w_z = jnp.concatenate([w_ih[:, D:2 * D], w_hh[:, D:2 * D]], axis=0)          # (G+D, D)
    w_in = w_ih[:, 2 * D:]                                                       # (G, D)
    w_hn = w_hh[:, 2 * D:]                                                       # (D, D)
    b_r = b_ih[:, :D] + b_hh[:, :D]
    b_z = b_ih[:, D:2 * D] + b_hh[:, D:2 * D]
    b_in = b_ih[:, 2 * D:]
    b_hn = b_hh[:, 2 * D:]
    if compute_dtype != jnp.float32:
        w_r, w_z, w_in, w_hn = (w.astype(compute_dtype) for w in (w_r, w_z, w_in, w_hn))

    bn_scale = (params["bn_gamma"] / jnp.sqrt(params["bn_var"] + BN_EPS))[None, :]
    bn_shift = params["bn_beta"][None, :] - params["bn_mean"][None, :] * bn_scale

    # Pallas kernel 2: fused softmax-normalize + ELU + GRUCell + ReLU + BatchNorm(eval).
    return gru_bn_pallas(c_un, denom[:, None], node_feats,
                         w_r, w_z, w_in, w_hn, b_r, b_z, b_in, b_hn,
                         bn_scale, bn_shift, tile_n=tile_n, compute_dtype=compute_dtype)


# ---------------------------------------------------------------------------
# Params (PyTorch-style init) and pure-JAX reference.
# ---------------------------------------------------------------------------
def init_params(key, node_feat_size, graph_feat_size, dtype=jnp.float32):
    D, G = node_feat_size, graph_feat_size
    ks = jax.random.split(key, 12)

    def uni(k, shape, fan_in):
        bound = 1.0 / float(fan_in) ** 0.5
        return jax.random.uniform(k, shape, dtype, -bound, bound)

    # project_edge: Linear(2D, 1)   (stored transposed: [2D, 1], bias scalar)
    w_att = uni(ks[0], (2 * D, 1), 2 * D)
    b_att = uni(ks[1], (), 2 * D)
    # project_node: Linear(D, G)
    w_proj = uni(ks[2], (D, G), D)
    b_proj = uni(ks[3], (1, G), D)
    # GRUCell(input=G, hidden=D): transposed weights, gate order (r, z, n)
    w_ih = uni(ks[4], (G, 3 * D), D)
    w_hh = uni(ks[5], (D, 3 * D), D)
    b_ih = uni(ks[6], (1, 3 * D), D)
    b_hh = uni(ks[7], (1, 3 * D), D)
    # BatchNorm1d(G), eval mode: affine params + running stats
    bn_gamma = jax.random.uniform(ks[8], (G,), dtype, 0.5, 1.5)
    bn_beta = jax.random.uniform(ks[9], (G,), dtype, -0.5, 0.5)
    bn_mean = 0.1 * jax.random.normal(ks[10], (G,), dtype)
    bn_var = jax.random.uniform(ks[11], (G,), dtype, 0.5, 1.5)
    return dict(w_att=w_att, b_att=b_att, w_proj=w_proj, b_proj=b_proj,
                w_ih=w_ih, b_ih=b_ih, w_hh=w_hh, b_hh=b_hh,
                bn_gamma=bn_gamma, bn_beta=bn_beta, bn_mean=bn_mean, bn_var=bn_var)


def reference_forward(node_feats, src_idx, dst_idx, params):
    """Pure-JAX reference mirroring the PyTorch GNNLayer (inference mode)."""
    N, D = node_feats.shape
    hi = jax.lax.Precision.HIGHEST
    he = jnp.concatenate([node_feats[dst_idx], node_feats[src_idx]], axis=1)
    logits = _leaky_relu(jnp.dot(he, params["w_att"], precision=hi)[:, 0] + params["b_att"])
    lmax = jax.ops.segment_max(logits, dst_idx, num_segments=N)
    p = jnp.exp(logits - lmax[dst_idx])
    denom = jax.ops.segment_sum(p, dst_idx, num_segments=N)
    a = p / denom[dst_idx]
    hv = jnp.dot(node_feats, params["w_proj"], precision=hi) + params["b_proj"]
    c = jax.ops.segment_sum(a[:, None] * hv[src_idx], dst_idx, num_segments=N)
    ctx = _elu(c)
    gi = jnp.dot(ctx, params["w_ih"], precision=hi) + params["b_ih"]
    gh = jnp.dot(node_feats, params["w_hh"], precision=hi) + params["b_hh"]
    r = jax.nn.sigmoid(gi[:, :D] + gh[:, :D])
    z = jax.nn.sigmoid(gi[:, D:2 * D] + gh[:, D:2 * D])
    n = jnp.tanh(gi[:, 2 * D:] + r * gh[:, 2 * D:])
    h_new = (1.0 - z) * n + z * node_feats
    y = jnp.maximum(h_new, 0.0)
    bn_scale = params["bn_gamma"] / jnp.sqrt(params["bn_var"] + BN_EPS)
    bn_shift = params["bn_beta"] - params["bn_mean"] * bn_scale
    return y * bn_scale + bn_shift


if __name__ == "__main__":
    # Small synthetic graph (node_feat_size == graph_feat_size, as in AttentiveFP GNNLayer).
    N = 30            # nodes (not a multiple of 8 -> ragged last block; grid has 2 steps)
    E = 96            # edges
    node_feat_size = 32
    graph_feat_size = 32

    key = jax.random.PRNGKey(0)
    k_h, k_src, k_dst, k_par = jax.random.split(key, 4)
    node_feats = jax.random.normal(k_h, (N, node_feat_size), jnp.float32)
    src_idx = jax.random.randint(k_src, (E,), 0, N)
    dst_idx = jax.random.randint(k_dst, (E,), 0, N)

    params = init_params(k_par, node_feat_size, graph_feat_size)

    # f32 path: strict check against the pure-JAX reference.
    out = gnn_layer_forward(node_feats, src_idx, dst_idx, params)
    out = jax.block_until_ready(out)
    ref = reference_forward(node_feats, src_idx, dst_idx, params)
    assert out.shape == (N, graph_feat_size)
    assert jnp.allclose(out, ref, atol=1e-3, rtol=1e-3), "f32 mismatch vs reference"

    # bf16 MXU-operand path (v6e/v7x item): f32 accumulation + f32 gate math, looser check.
    out_bf16 = gnn_layer_forward(node_feats, src_idx, dst_idx, params,
                                 compute_dtype=jnp.bfloat16)
    out_bf16 = jax.block_until_ready(out_bf16)
    assert out_bf16.shape == (N, graph_feat_size)
    assert bool(jnp.all(jnp.isfinite(out_bf16)))
    assert jnp.allclose(out_bf16, ref, atol=8e-2, rtol=8e-2), "bf16 drift too large"

    print("KERNEL_OK")
</pallas_src>

<mosaic_0001>
module attributes {stable_mosaic.version = 11 : i64} {
  func.func private @main(%arg0: i32) attributes {dimension_semantics = [#tpu.dimension_semantics<core_parallel>], iteration_bounds = array<i64: 2>, tpu.core_type = #tpu.core_type<sc_scalar_subcore>, window_params = []} {
    return
  }
}

module attributes {stable_mosaic.version = 11 : i64} {
  func.func private @main(%arg0: i32) attributes {dimension_semantics = [#tpu.dimension_semantics<core_parallel>], iteration_bounds = array<i64: 2>, tpu.core_type = #tpu.core_type<sc_scalar_subcore>, window_params = []} {
    return
  }
}

module attributes {stable_mosaic.version = 11 : i64} {
  func.func @_node_project_kernel(%arg0: i32, %arg1: memref<16x32xf32, #tpu.memory_space<vmem>>, %arg2: memref<32x34xf32, #tpu.memory_space<vmem>>, %arg3: memref<1x34xf32, #tpu.memory_space<vmem>>, %arg4: memref<16x34xf32, #tpu.memory_space<vmem>>) attributes {dimension_semantics = [#tpu.dimension_semantics<parallel>], iteration_bounds = array<i64: 2>, scalar_prefetch = 0 : i64, scratch_operands = 0 : i64, tpu.core_type = #tpu.core_type<tc>, window_params = [{transform_indices = @transform_0, window_bounds = array<i64: 16, 32>}, {pipeline_mode = #tpu.pipeline_mode<synchronous>, transform_indices = @transform_1, window_bounds = array<i64: 32, 34>}, {pipeline_mode = #tpu.pipeline_mode<synchronous>, transform_indices = @transform_2, window_bounds = array<i64: 1, 34>}, {transform_indices = @transform_3, window_bounds = array<i64: 16, 34>}]} {
    %c0 = arith.constant 0 : index
    %c0_0 = arith.constant 0 : index
    %0 = vector.load %arg1[%c0, %c0_0] : memref<16x32xf32, #tpu.memory_space<vmem>>, vector<16x32xf32>
    %c0_1 = arith.constant 0 : index
    %c0_2 = arith.constant 0 : index
    %1 = vector.load %arg2[%c0_1, %c0_2] : memref<32x34xf32, #tpu.memory_space<vmem>>, vector<32x34xf32>
    %cst = arith.constant dense<0.000000e+00> : vector<16x34xf32>
    %2 = tpu.matmul %0, %1, %cst {dimension_numbers = #tpu.dot_dimension_numbers<[1], [0], [0], [1], [0, 0, 1, 1], [], []>} : vector<16x32xf32>, vector<32x34xf32>, vector<16x34xf32> -> vector<16x34xf32>
    %c0_3 = arith.constant 0 : index
    %c0_4 = arith.constant 0 : index
    %3 = vector.load %arg3[%c0_3, %c0_4] : memref<1x34xf32, #tpu.memory_space<vmem>>, vector<1x34xf32>
    %4 = vector.broadcast %3 : vector<1x34xf32> to vector<16x34xf32>
    %5 = arith.addf %2, %4 : vector<16x34xf32>
    %c0_5 = arith.constant 0 : index
    %c0_6 = arith.constant 0 : index
    %6 = vector.load %arg4[%c0_5, %c0_6] : memref<16x34xf32, #tpu.memory_space<vmem>>, vector<16x34xf32>
    tpu.vector_store %arg4[%c0_5, %c0_6], %5 {strides = array<i32>} : memref<16x34xf32, #tpu.memory_space<vmem>>, vector<16x34xf32>,
    return
  }
  func.func @transform_0(%arg0: i32) -> (i32, i32) {
    %c0_i32 = arith.constant 0 : i32
    %c0_i32_0 = arith.constant 0 : i32
    return %arg0, %c0_i32 : i32, i32
  }
  func.func @transform_1(%arg0: i32) -> (i32, i32) {
    %c0_i32 = arith.constant 0 : i32
    %c0_i32_0 = arith.constant 0 : i32
    %c0_i32_1 = arith.constant 0 : i32
    return %c0_i32, %c0_i32_0 : i32, i32
  }
  func.func @transform_2(%arg0: i32) -> (i32, i32) {
    %c0_i32 = arith.constant 0 : i32
    %c0_i32_0 = arith.constant 0 : i32
    %c0_i32_1 = arith.constant 0 : i32
    return %c0_i32, %c0_i32_0 : i32, i32
  }
  func.func @transform_3(%arg0: i32) -> (i32, i32) {
    %c0_i32 = arith.constant 0 : i32
    %c0_i32_0 = arith.constant 0 : i32
    return %arg0, %c0_i32 : i32, i32
  }
}

module attributes {stable_mosaic.version = 11 : i64} {
  func.func @_gru_bn_kernel(%arg0: i32, %arg1: memref<16x32xf32, #tpu.memory_space<vmem>>, %arg2: memref<16x1xf32, #tpu.memory_space<vmem>>, %arg3: memref<16x32xf32, #tpu.memory_space<vmem>>, %arg4: memref<64x32xf32, #tpu.memory_space<vmem>>, %arg5: memref<64x32xf32, #tpu.memory_space<vmem>>, %arg6: memref<32x32xf32, #tpu.memory_space<vmem>>, %arg7: memref<32x32xf32, #tpu.memory_space<vmem>>, %arg8: memref<1x32xf32, #tpu.memory_space<vmem>>, %arg9: memref<1x32xf32, #tpu.memory_space<vmem>>, %arg10: memref<1x32xf32, #tpu.memory_space<vmem>>, %arg11: memref<1x32xf32, #tpu.memory_space<vmem>>, %arg12: memref<1x32xf32, #tpu.memory_space<vmem>>, %arg13: memref<1x32xf32, #tpu.memory_space<vmem>>, %arg14: memref<16x32xf32, #tpu.memory_space<vmem>>, %arg15: memref<16x64xf32, #tpu.memory_space<vmem>>) attributes {dimension_semantics = [#tpu.dimension_semantics<parallel>], iteration_bounds = array<i64: 2>, scalar_prefetch = 0 : i64, scratch_operands = 1 : i64, tpu.core_type = #tpu.core_type<tc>, window_params = [{transform_indices = @transform_0, window_bounds = array<i64: 16, 32>}, {transform_indices = @transform_1, window_bounds = array<i64: 16, 1>}, {transform_indices = @transform_2, window_bounds = array<i64: 16, 32>}, {pipeline_mode = #tpu.pipeline_mode<synchronous>, transform_indices = @transform_3, window_bounds = array<i64: 64, 32>}, {pipeline_mode = #tpu.pipeline_mode<synchronous>, transform_indices = @transform_4, window_bounds = array<i64: 64, 32>}, {pipeline_mode = #tpu.pipeline_mode<synchronous>, transform_indices = @transform_5, window_bounds = array<i64: 32, 32>}, {pipeline_mode = #tpu.pipeline_mode<synchronous>, transform_indices = @transform_6, window_bounds = array<i64: 32, 32>}, {pipeline_mode = #tpu.pipeline_mode<synchronous>, transform_indices = @transform_7, window_bounds = array<i64: 1, 32>}, {pipeline_mode = #tpu.pipeline_mode<synchronous>, transform_indices = @transform_8, window_bounds = array<i64: 1, 32>}, {pipeline_mode = #tpu.pipeline_mode<synchronous>, transform_indices = @transform_9, window_bounds = array<i64: 1, 32>}, {pipeline_mode = #tpu.pipeline_mode<synchronous>, transform_indices = @transform_10, window_bounds = array<i64: 1, 32>}, {pipeline_mode = #tpu.pipeline_mode<synchronous>, transform_indices = @transform_11, window_bounds = array<i64: 1, 32>}, {pipeline_mode = #tpu.pipeline_mode<synchronous>, transform_indices = @transform_12, window_bounds = array<i64: 1, 32>}, {transform_indices = @transform_13, window_bounds = array<i64: 16, 32>}]} {
    %c0 = arith.constant 0 : index
    %c0_0 = arith.constant 0 : index
    %0 = vector.load %arg2[%c0, %c0_0] : memref<16x1xf32, #tpu.memory_space<vmem>>, vector<16x1xf32>
    %cst = arith.constant 0.000000e+00 : f32
    %1 = vector.broadcast %cst : f32 to vector<16x1xf32>
    %2 = arith.cmpf ogt, %0, %1 : vector<16x1xf32>
    %cst_1 = arith.constant 1.000000e+00 : f32
    %3 = vector.broadcast %cst_1 : f32 to vector<16x1xf32>
    %4 = arith.divf %3, %0 : vector<16x1xf32>
    %cst_2 = arith.constant 0.000000e+00 : f32
    %5 = vector.broadcast %cst_2 : f32 to vector<16x1xf32>
    %6 = arith.select %2, %4, %5 : vector<16x1xi1>, vector<16x1xf32>
    %c0_3 = arith.constant 0 : index
    %c0_4 = arith.constant 0 : index
    %7 = vector.load %arg1[%c0_3, %c0_4] : memref<16x32xf32, #tpu.memory_space<vmem>>, vector<16x32xf32>
    %8 = vector.broadcast %6 : vector<16x1xf32> to vector<16x32xf32>
    %9 = arith.mulf %7, %8 : vector<16x32xf32>
    %cst_5 = arith.constant 0.000000e+00 : f32
    %10 = vector.broadcast %cst_5 : f32 to vector<16x32xf32>
    %11 = arith.cmpf ogt, %9, %10 : vector<16x32xf32>
    %cst_6 = arith.constant 0.000000e+00 : f32
    %12 = vector.broadcast %cst_6 : f32 to vector<16x32xf32>
    %13 = arith.minimumf %9, %12 : vector<16x32xf32>
    %14 = math.exp %13 : vector<16x32xf32>
    %cst_7 = arith.constant 1.000000e+00 : f32
    %15 = vector.broadcast %cst_7 : f32 to vector<16x32xf32>
    %16 = arith.subf %14, %15 : vector<16x32xf32>
    %17 = arith.select %11, %9, %16 : vector<16x32xi1>, vector<16x32xf32>
    %c0_8 = arith.constant 0 : index
    %c0_9 = arith.constant 0 : index
    %18 = vector.load %arg3[%c0_8, %c0_9] : memref<16x32xf32, #tpu.memory_space<vmem>>, vector<16x32xf32>
    %c0_10 = arith.constant 0 : index
    %c0_11 = arith.constant 0 : index
    %19 = vector.load %arg15[%c0_10, %c0_11] : memref<16x64xf32, #tpu.memory_space<vmem>>, vector<16x32xf32>
    tpu.vector_store %arg15[%c0_10, %c0_11], %17 {strides = array<i32>} : memref<16x64xf32, #tpu.memory_space<vmem>>, vector<16x32xf32>,
    %c0_12 = arith.constant 0 : index
    %c32 = arith.constant 32 : index
    %20 = vector.load %arg15[%c0_12, %c32] : memref<16x64xf32, #tpu.memory_space<vmem>>, vector<16x32xf32>
    tpu.vector_store %arg15[%c0_12, %c32], %18 {strides = array<i32>} : memref<16x64xf32, #tpu.memory_space<vmem>>, vector<16x32xf32>,
    %c0_13 = arith.constant 0 : index
    %c0_14 = arith.constant 0 : index
    %21 = vector.load %arg15[%c0_13, %c0_14] : memref<16x64xf32, #tpu.memory_space<vmem>>, vector<16x64xf32>
    %c0_15 = arith.constant 0 : index
    %c0_16 = arith.constant 0 : index
    %22 = vector.load %arg4[%c0_15, %c0_16] : memref<64x32xf32, #tpu.memory_space<vmem>>, vector<64x32xf32>
    %cst_17 = arith.constant dense<0.000000e+00> : vector<16x32xf32>
    %23 = tpu.matmul %21, %22, %cst_17 {dimension_numbers = #tpu.dot_dimension_numbers<[1], [0], [0], [1], [0, 0, 1, 1], [], []>} : vector<16x64xf32>, vector<64x32xf32>, vector<16x32xf32> -> vector<16x32xf32>
    %c0_18 = arith.constant 0 : index
    %c0_19 = arith.constant 0 : index
    %24 = vector.load %arg8[%c0_18, %c0_19] : memref<1x32xf32, #tpu.memory_space<vmem>>, vector<1x32xf32>
    %25 = vector.broadcast %24 : vector<1x32xf32> to vector<16x32xf32>
    %26 = arith.addf %23, %25 : vector<16x32xf32>
    %27 = arith.negf %26 : vector<16x32xf32>
    %28 = math.exp %27 : vector<16x32xf32>
    %cst_20 = arith.constant 1.000000e+00 : f32
    %29 = vector.broadcast %cst_20 : f32 to vector<16x32xf32>
    %30 = arith.addf %29, %28 : vector<16x32xf32>
    %31 = arith.divf %29, %30 : vector<16x32xf32>
    %c0_21 = arith.constant 0 : index
    %c0_22 = arith.constant 0 : index
    %32 = vector.load %arg5[%c0_21, %c0_22] : memref<64x32xf32, #tpu.memory_space<vmem>>, vector<64x32xf32>
    %cst_23 = arith.constant dense<0.000000e+00> : vector<16x32xf32>
    %33 = tpu.matmul %21, %32, %cst_23 {dimension_numbers = #tpu.dot_dimension_numbers<[1], [0], [0], [1], [0, 0, 1, 1], [], []>} : vector<16x64xf32>, vector<64x32xf32>, vector<16x32xf32> -> vector<16x32xf32>
    %c0_24 = arith.constant 0 : index
    %c0_25 = arith.constant 0 : index
    %34 = vector.load %arg9[%c0_24, %c0_25] : memref<1x32xf32, #tpu.memory_space<vmem>>, vector<1x32xf32>
    %35 = vector.broadcast %34 : vector<1x32xf32> to vector<16x32xf32>
    %36 = arith.addf %33, %35 : vector<16x32xf32>
    %37 = arith.negf %36 : vector<16x32xf32>
    %38 = math.exp %37 : vector<16x32xf32>
    %cst_26 = arith.constant 1.000000e+00 : f32
    %39 = vector.broadcast %cst_26 : f32 to vector<16x32xf32>
    %40 = arith.addf %39, %38 : vector<16x32xf32>
    %41 = arith.divf %39, %40 : vector<16x32xf32>
    %c0_27 = arith.constant 0 : index
    %c0_28 = arith.constant 0 : index
    %42 = vector.load %arg6[%c0_27, %c0_28] : memref<32x32xf32, #tpu.memory_space<vmem>>, vector<32x32xf32>
    %cst_29 = arith.constant dense<0.000000e+00> : vector<16x32xf32>
    %43 = tpu.matmul %17, %42, %cst_29 {dimension_numbers = #tpu.dot_dimension_numbers<[1], [0], [0], [1], [0, 0, 1, 1], [], []>} : vector<16x32xf32>, vector<32x32xf32>, vector<16x32xf32> -> vector<16x32xf32>
    %c0_30 = arith.constant 0 : index
    %c0_31 = arith.constant 0 : index
    %44 = vector.load %arg10[%c0_30, %c0_31] : memref<1x32xf32, #tpu.memory_space<vmem>>, vector<1x32xf32>
    %45 = vector.broadcast %44 : vector<1x32xf32> to vector<16x32xf32>
    %46 = arith.addf %43, %45 : vector<16x32xf32>
    %c0_32 = arith.constant 0 : index
    %c0_33 = arith.constant 0 : index
    %47 = vector.load %arg7[%c0_32, %c0_33] : memref<32x32xf32, #tpu.memory_space<vmem>>, vector<32x32xf32>
    %cst_34 = arith.constant dense<0.000000e+00> : vector<16x32xf32>
    %48 = tpu.matmul %18, %47, %cst_34 {dimension_numbers = #tpu.dot_dimension_numbers<[1], [0], [0], [1], [0, 0, 1, 1], [], []>} : vector<16x32xf32>, vector<32x32xf32>, vector<16x32xf32> -> vector<16x32xf32>
    %c0_35 = arith.constant 0 : index
    %c0_36 = arith.constant 0 : index
    %49 = vector.load %arg11[%c0_35, %c0_36] : memref<1x32xf32, #tpu.memory_space<vmem>>, vector<1x32xf32>
    %50 = vector.broadcast %49 : vector<1x32xf32> to vector<16x32xf32>
    %51 = arith.addf %48, %50 : vector<16x32xf32>
    %52 = arith.mulf %31, %51 : vector<16x32xf32>
    %53 = arith.addf %46, %52 : vector<16x32xf32>
    %54 = math.tanh %53 : vector<16x32xf32>
    %cst_37 = arith.constant 1.000000e+00 : f32
    %55 = vector.broadcast %cst_37 : f32 to vector<16x32xf32>
    %56 = arith.subf %55, %41 : vector<16x32xf32>
    %57 = arith.mulf %56, %54 : vector<16x32xf32>
    %58 = arith.mulf %41, %18 : vector<16x32xf32>
    %59 = arith.addf %57, %58 : vector<16x32xf32>
    %cst_38 = arith.constant 0.000000e+00 : f32
    %60 = vector.broadcast %cst_38 : f32 to vector<16x32xf32>
    %61 = arith.maximumf %59, %60 : vector<16x32xf32>
    %c0_39 = arith.constant 0 : index
    %c0_40 = arith.constant 0 : index
    %62 = vector.load %arg12[%c0_39, %c0_40] : memref<1x32xf32, #tpu.memory_space<vmem>>, vector<1x32xf32>
    %63 = vector.broadcast %62 : vector<1x32xf32> to vector<16x32xf32>
    %64 = arith.mulf %61, %63 : vector<16x32xf32>
    %c0_41 = arith.constant 0 : index
    %c0_42 = arith.constant 0 : index
    %65 = vector.load %arg13[%c0_41, %c0_42] : memref<1x32xf32, #tpu.memory_space<vmem>>, vector<1x32xf32>
    %66 = vector.broadcast %65 : vector<1x32xf32> to vector<16x32xf32>
    %67 = arith.addf %64, %66 : vector<16x32xf32>
    %c0_43 = arith.constant 0 : index
    %c0_44 = arith.constant 0 : index
    %68 = vector.load %arg14[%c0_43, %c0_44] : memref<16x32xf32, #tpu.memory_space<vmem>>, vector<16x32xf32>
    tpu.vector_store %arg14[%c0_43, %c0_44], %67 {strides = array<i32>} : memref<16x32xf32, #tpu.memory_space<vmem>>, vector<16x32xf32>,
    return
  }
  func.func @transform_0(%arg0: i32) -> (i32, i32) {
    %c0_i32 = arith.constant 0 : i32
    %c0_i32_0 = arith.constant 0 : i32
    return %arg0, %c0_i32 : i32, i32
  }
  func.func @transform_1(%arg0: i32) -> (i32, i32) {
    %c0_i32 = arith.constant 0 : i32
    %c0_i32_0 = arith.constant 0 : i32
    return %arg0, %c0_i32 : i32, i32
  }
  func.func @transform_2(%arg0: i32) -> (i32, i32) {
    %c0_i32 = arith.constant 0 : i32
    %c0_i32_0 = arith.constant 0 : i32
    return %arg0, %c0_i32 : i32, i32
  }
  func.func @transform_3(%arg0: i32) -> (i32, i32) {
    %c0_i32 = arith.constant 0 : i32
    %c0_i32_0 = arith.constant 0 : i32
    %c0_i32_1 = arith.constant 0 : i32
    return %c0_i32, %c0_i32_0 : i32, i32
  }
  func.func @transform_4(%arg0: i32) -> (i32, i32) {
    %c0_i32 = arith.constant 0 : i32
    %c0_i32_0 = arith.constant 0 : i32
    %c0_i32_1 = arith.constant 0 : i32
    return %c0_i32, %c0_i32_0 : i32, i32
  }
  func.func @transform_5(%arg0: i32) -> (i32, i32) {
    %c0_i32 = arith.constant 0 : i32
    %c0_i32_0 = arith.constant 0 : i32
    %c0_i32_1 = arith.constant 0 : i32
    return %c0_i32, %c0_i32_0 : i32, i32
  }
  func.func @transform_6(%arg0: i32) -> (i32, i32) {
    %c0_i32 = arith.constant 0 : i32
    %c0_i32_0 = arith.constant 0 : i32
    %c0_i32_1 = arith.constant 0 : i32
    return %c0_i32, %c0_i32_0 : i32, i32
  }
  func.func @transform_7(%arg0: i32) -> (i32, i32) {
    %c0_i32 = arith.constant 0 : i32
    %c0_i32_0 = arith.constant 0 : i32
    %c0_i32_1 = arith.constant 0 : i32
    return %c0_i32, %c0_i32_0 : i32, i32
  }
  func.func @transform_8(%arg0: i32) -> (i32, i32) {
    %c0_i32 = arith.constant 0 : i32
    %c0_i32_0 = arith.constant 0 : i32
    %c0_i32_1 = arith.constant 0 : i32
    return %c0_i32, %c0_i32_0 : i32, i32
  }
  func.func @transform_9(%arg0: i32) -> (i32, i32) {
    %c0_i32 = arith.constant 0 : i32
    %c0_i32_0 = arith.constant 0 : i32
    %c0_i32_1 = arith.constant 0 : i32
    return %c0_i32, %c0_i32_0 : i32, i32
  }
  func.func @transform_10(%arg0: i32) -> (i32, i32) {
    %c0_i32 = arith.constant 0 : i32
    %c0_i32_0 = arith.constant 0 : i32
    %c0_i32_1 = arith.constant 0 : i32
    return %c0_i32, %c0_i32_0 : i32, i32
  }
  func.func @transform_11(%arg0: i32) -> (i32, i32) {
    %c0_i32 = arith.constant 0 : i32
    %c0_i32_0 = arith.constant 0 : i32
    %c0_i32_1 = arith.constant 0 : i32
    return %c0_i32, %c0_i32_0 : i32, i32
  }
  func.func @transform_12(%arg0: i32) -> (i32, i32) {
    %c0_i32 = arith.constant 0 : i32
    %c0_i32_0 = arith.constant 0 : i32
    %c0_i32_1 = arith.constant 0 : i32
    return %c0_i32, %c0_i32_0 : i32, i32
  }
  func.func @transform_13(%arg0: i32) -> (i32, i32) {
    %c0_i32 = arith.constant 0 : i32
    %c0_i32_0 = arith.constant 0 : i32
    return %arg0, %c0_i32 : i32, i32
  }
}

</mosaic_0001>

<bundles_post_ra>
// kernel: gnn_layer_forward.2
= control target key start
LH: loop header
LB: loop body
LE: loop exit
PB: predicated region body
PF: predicated region fallthrough
CT: control target
= control target key end

     0   :  { %s403_s12 = smov 0   ;;  %s435_s0 = inlined_call_operand.vmem [shape: f32[30,32], index: 0, kind: input, shape index: {}]   ;;  %s436_s1 = inlined_call_operand.vmem [shape: f32[32,34], index: 1, kind: input, shape index: {}]   ;;  %s437_s2 = inlined_call_operand.vmem [shape: f32[1,34], index: 2, kind: input, shape index: {}]   ;;  %s438_s3 = inlined_call_operand.vmem [shape: f32[30,34], index: 3, kind: output, shape index: {}]  }
   0x1 LB: > { %s328_s13 = sadd.s32 4294967295, %s381_s12   ;;  %p332_p0 = scmp.ge.s32.totalorder %s381_s12, 1  ;;  %s381_s12 = sphi %s403_s12, %s13_s12  }
   0x2   : > { %p138_p1 = scmp.lt.s32.totalorder %s381_s12, 3 }
   0x4   : > { %p139_p2 = pnand %p332_p0, %p138_p1 }
   0x5   : > { %v176_v0 = vld [vmem:[%s436_s1] sm:$0xff] (!%p139_p2)  ;;  %v177_v1 = vld [vmem:[%s436_s1 + $0x8] sm:$0xff] (!%p139_p2)  ;;  %v178_v2 = vld [vmem:[%s436_s1 + $0x10] sm:$0xff] (!%p139_p2)  ;;  %s333_s20 = sshll.u32 (!%p139_p2), %s328_s13, 1  ;;  %vm187_vm0 = vcmask (!%p139_p2), 261120   ;;  %vm269_vm1 = vcmask (!%p139_p2), 277504  }
   0x6   : > { %142 = sbr.rel (%p139_p2) target bundleno = 234 (0xea), region = 32  ;;  %v359_v3 = vpack.c.bf16 (!%p139_p2), %v177_v1, %v176_v0  ;;  %v179_v4 = vld [vmem:[%s436_s1 + $0x18] sm:$0xff] (!%p139_p2)  ;;  %p163_p3 = scmp.lt.s32.totalorder (!%p139_p2), %s333_s20, 3  ;;  %v337_v8 = vld [vmem:[%s437_s2] ss:$0 sm:$0xff] (!%p139_p2) }
   0x7   : > { %v363_v5 = vpack.c.bf16 (!%p139_p2), %v179_v4, %v178_v2 }
   0x8   : > { %360 = vmatprep.subr.bf16.mxu0 (!%p139_p2), %v359_v3 }
   0x9   : > { %362 = vmatpush3.bf16.msra.mxu0 (!%p139_p2), %v359_v3 }
   0xa   : > { %364 = vmatprep.subr.bf16.mxu0 (!%p139_p2), %v363_v5 }
   0xd   : > { %s440_s20 = smov (!%p163_p3, %s333_s20), 3  ;;  %366 = vmatpush3.bf16.msra.mxu0 %v363_v5 }
   0xe   : > { %s334_s23 = sshll.u32 %s440_s20, 3 }
   0xf   : > { %s166_s26 = scalar_lea.vmem %s435_s0, %s334_s23  ;;  %s172_s4 = scalar_lea.vmem %s438_s3, %s334_s23 }
  0x10   : > { %v174_v6 = vld [vmem:[%s166_s26] sm:$0xff]  ;;  %v175_v7 = vld [vmem:[%s166_s26 + $0x8] sm:$0xff] }
  0x11   : > { %356 = vmatprep.mubr.msk.f32.mxu0 %vm187_vm0, %v174_v6 }
  0x12   : > { %357 = vmatmul.mubr.msk.f32.vlgmr.msra.gmra.mrb[0].mxu0 %vm187_vm0, %v175_v7 }
  0xe5   : > { %v358_v9 = vpop.f32.mrb[0].mxu0 }
  0xe6   : > { %v260_v10 = vpop.f32.mrb[1].mxu0  ;;  %v266_v12 = vadd.f32 %v358_v9, %v337_v8 }
  0xe7   : > { %v261_v11 = vadd.f32 %v337_v8, %v260_v10 }
  0xe8   : > { %271 = vst.msk [vmem:[%s172_s4 + $0x8] sm:$0xff] %vm269_vm1, %v266_v12 }
  0xe9   : > { %270 = vst.msk [vmem:[%s172_s4] sm:$0xff] %vm269_vm1, %v261_v11 }
  0xea PF: > { %s13_s12 = sadd.s32 1, %s381_s12  }
  0xeb   : > { %p10_p4 = scmp.ge.s32.totalorder %s13_s12, 4  }
  0xed   :  { %12 = sbr.rel (!%p10_p4) target bundleno = 1 (0x1), region = 62 }

// kernel: gnn_layer_forward.3
= control target key start
LH: loop header
LB: loop body
LE: loop exit
PB: predicated region body
PF: predicated region fallthrough
CT: control target
= control target key end

     0   :  { %s1678_s0 = inlined_call_operand.vmem [shape: f32[30,32], index: 0, kind: input, shape index: {}]   ;;  %s1679_s1 = inlined_call_operand.vmem [shape: f32[30,1], index: 1, kind: input, shape index: {}]   ;;  %s1680_s2 = inlined_call_operand.vmem [shape: f32[30,32], index: 2, kind: input, shape index: {}]   ;;  %s1681_s3 = inlined_call_operand.vmem [shape: f32[64,32], index: 3, kind: input, shape index: {}]   ;;  %s1682_s4 = inlined_call_operand.vmem [shape: f32[64,32], index: 4, kind: input, shape index: {}]   ;;  %s1683_s5 = inlined_call_operand.vmem [shape: f32[32,32], index: 5, kind: input, shape index: {}]   ;;  %s1684_s6 = inlined_call_operand.vmem [shape: f32[32,32], index: 6, kind: input, shape index: {}]   ;;  %s1685_s7 = inlined_call_operand.vmem [shape: f32[1,32], index: 7, kind: input, shape index: {}]   ;;  %s1686_s8 = inlined_call_operand.vmem [shape: f32[1,32], index: 8, kind: input, shape index: {}]   ;;  %s1687_s9 = inlined_call_operand.vmem [shape: f32[1,32], index: 9, kind: input, shape index: {}]   ;;  %s1688_s10 = inlined_call_operand.vmem [shape: f32[1,32], index: 10, kind: input, shape index: {}]   ;;  %s1689_s11 = inlined_call_operand.vmem [shape: f32[1,32], index: 11, kind: input, shape index: {}]   ;;  %s1690_s12 = inlined_call_operand.vmem [shape: f32[1,32], index: 12, kind: input, shape index: {}]   ;;  %s1691_s13 = inlined_call_operand.hbm [shape: f32[30,32], index: 13, kind: output, shape index: {}]  }
   0x1   :  { %1692 = sst [smem:[#allocation7_spill]] %s1678_s0 }
   0x2   :  { %1693 = sst [smem:[#allocation8_spill]] %s1679_s1 }
   0x3   :  { %1694 = sst [smem:[#allocation9_spill]] %s1680_s2 }
   0x4   :  { %18 = vsyncpa [#allocation4], 0 }
   0x5   :  { %20 = vsyncpa [#allocation4 + $0x1], 0  ;;  %s1457_s25 = smov 0   ;;  %s1459_s26 = smov 0  }
   0x6   :  { %s1461_s27 = smov 0   ;;  %s1463_s28 = smov 0  }
   0x7 LB: > { %s1478_s29 = sadd.s32 4294967295, %s1380_s28   ;;  %s1069_s30 = sadd.s32 4294967294, %s1380_s28   ;;  %s1380_s28 = sphi %s1463_s28, %s1705_s28   ;;  %s1376_s27 = sphi %s1461_s27, %s1704_s27   ;;  %s1372_s26 = sphi %s1459_s26, %s1703_s26   ;;  %s1368_s25 = sphi %s1457_s25, %s1702_s25  }
   0x8   : > { %s1482_s14 = sadd.s32 1, %s1380_s28   ;;  %s321_s15 = sadd.s32 1, %s1376_s27 }
   0x9   : > { %s318_s16 = ssub.s32 %s1380_s28, %s1482_s14  ;;  %p331_p0 = scmp.ne.s32.totalorder %s1376_s27, %s1372_s26 }
   0xa   : > { %p319_p1 = scmp.eq.s32.totalorder %s318_s16, 0  ;;  %p332_p2 = scmp.eq.s32.totalorder %s1478_s29, 1 }
   0xb   : > { %p337_p3 = scmp.ne.s32.totalorder %s1372_s26, %s1368_s25  ;;  %p338_p4 = scmp.eq.s32.totalorder %s1069_s30, 1 }
   0xc   : > { %s1493_s17 = scalar_select %p319_p1, %s1376_s27, %s321_s15  }
   0xd   : > { %p1495_p5 = por %p332_p2, %p331_p0  ;;  %p1499_p6 = por %p338_p4, %p337_p3 }
   0xe   : > { %1695 = sst [smem:[#allocation6_spill]] %s1493_s17  ;;  %p1072_p7 = scmp.ge.s32.totalorder %s1380_s28, 1 }
   0xf   : > { %p413_p8 = scmp.lt.s32.totalorder %s1380_s28, 3 }
  0x11   : > { %p414_p9 = pnand %p1072_p7, %p413_p8 }
  0x12   : > { %s1074_s20 = sshll.u32 (!%p414_p9), %s1478_s29, 1  ;;  %v1382_v0 = vmov (!%p414_p9), 0   ;;  %s1698_s1 = sld [smem:[#allocation8_spill]] (!%p414_p9)  ;;  %v540_v9 = vld [vmem:[%s1681_s3] sm:$0xff] (!%p414_p9)  ;;  %v541_v10 = vld [vmem:[%s1681_s3 + $0x8] sm:$0xff] (!%p414_p9)  ;;  %v542_v15 = vld [vmem:[%s1681_s3 + $0x10] sm:$0xff] (!%p414_p9) }
  0x13   : > { %417 = sbr.rel (%p414_p9) target bundleno = 484 (0x1e4), region = 72  ;;  %1289 = vset.pattern.permute.xlu0 (!%p414_p9), %v1382_v0  ;;  %p468_p10 = scmp.lt.s32.totalorder (!%p414_p9), %s1074_s20, 3  ;;  %v1198_v11 = vpack.c.bf16 (!%p414_p9), %v541_v10, %v540_v9  ;;  %v649_v12 = vld [vmem:[%s1682_s4] sm:$0xff] (!%p414_p9)  ;;  %v650_v13 = vld [vmem:[%s1682_s4 + $0x8] sm:$0xff] (!%p414_p9)  ;;  %v543_v16 = vld [vmem:[%s1681_s3 + $0x18] sm:$0xff] (!%p414_p9)  ;;  %vm524_vm2 = vcmask (!%p414_p9), 261120  }
  0x14   : > { %s1699_s2 = sld [smem:[#allocation9_spill]] (!%p414_p9)  ;;  %s1383_s17 = smov (!%p414_p9), 32   ;;  %v1214_v14 = vpack.c.bf16 (!%p414_p9), %v650_v13, %v649_v12  ;;  %v1202_v17 = vpack.c.bf16 (!%p414_p9), %v543_v16, %v542_v15  ;;  %v651_v18 = vld [vmem:[%s1682_s4 + $0x10] sm:$0xff] (!%p414_p9)  ;;  %v652_v19 = vld [vmem:[%s1682_s4 + $0x18] sm:$0xff] (!%p414_p9)  ;;  %v544_v21 = vld [vmem:[%s1681_s3 + $0x20] sm:$0xff] (!%p414_p9)  ;;  %vm535_vm4 = vcmask (!%p414_p9), 523520  }
  0x15   : > { %1199 = vmatprep.subr.bf16.mxu0 (!%p414_p9), %v1198_v11  ;;  %v1218_v20 = vpack.c.bf16 (!%p414_p9), %v652_v19, %v651_v18  ;;  %v545_v22 = vld [vmem:[%s1681_s3 + $0x28] sm:$0xff] (!%p414_p9)  ;;  %v653_v24 = vld [vmem:[%s1682_s4 + $0x20] sm:$0xff] (!%p414_p9)  ;;  %v546_v27 = vld [vmem:[%s1681_s3 + $0x30] sm:$0xff] (!%p414_p9)  ;;  %s1700_s0 = sld [smem:[#allocation7_spill]] (!%p414_p9)  ;;  %vm555_vm6 = vcmask (!%p414_p9), 523264  }
  0x16   : > { %1201 = vmatpush3.bf16.msra.mxu0 (!%p414_p9), %v1198_v11  ;;  %1215 = vmatprep.subr.bf16.mxu1 (!%p414_p9), %v1214_v14  ;;  %v1206_v23 = vpack.c.bf16 (!%p414_p9), %v545_v22, %v544_v21  ;;  %v654_v25 = vld [vmem:[%s1682_s4 + $0x28] sm:$0xff] (!%p414_p9)  ;;  %v547_v28 = vld [vmem:[%s1681_s3 + $0x38] sm:$0xff] (!%p414_p9)  ;;  %v655_v30 = vld [vmem:[%s1682_s4 + $0x30] sm:$0xff] (!%p414_p9) }
  0x17   : > { %1217 = vmatpush3.bf16.msra.mxu1 (!%p414_p9), %v1214_v14  ;;  %1203 = vmatprep.subr.bf16.mxu0 (!%p414_p9), %v1202_v17  ;;  %v1222_v26 = vpack.c.bf16 (!%p414_p9), %v654_v25, %v653_v24  ;;  %v1210_v29 = vpack.c.bf16 (!%p414_p9), %v547_v28, %v546_v27  ;;  %v656_v31 = vld [vmem:[%s1682_s4 + $0x38] sm:$0xff] (!%p414_p9)  ;;  %v751_v33 = vld [vmem:[%s1683_s5] sm:$0xff] (!%p414_p9)  ;;  %v752_v34 = vld [vmem:[%s1683_s5 + $0x8] sm:$0xff] (!%p414_p9) }
  0x18   : > { %1219 = vmatprep.subr.bf16.mxu1 (!%p414_p9), %v1218_v20  ;;  %v1226_v32 = vpack.c.bf16 (!%p414_p9), %v656_v31, %v655_v30  ;;  %v1230_v35 = vpack.c.bf16 (!%p414_p9), %v752_v34, %v751_v33  ;;  %v843_v36 = vld [vmem:[%s1684_s6] sm:$0xff] (!%p414_p9)  ;;  %v844_v37 = vld [vmem:[%s1684_s6 + $0x8] sm:$0xff] (!%p414_p9)  ;;  %v753_v58 = vld [vmem:[%s1683_s5 + $0x10] sm:$0xff] (!%p414_p9) }
  0x19   : > { %v1238_v38 = vpack.c.bf16 (!%p414_p9), %v844_v37, %v843_v36  ;;  %v754_v59 = vld [vmem:[%s1683_s5 + $0x18] sm:$0xff] (!%p414_p9)  ;;  %v845_v60 = vld [vmem:[%s1684_s6 + $0x10] sm:$0xff] (!%p414_p9)  ;;  %v1092_v30 = vld [vmem:[%s1687_s9] ss:$0 sm:$0xff] (!%p414_p9) }
  0x1a   : > { %s1707_s20 = smov (!%p468_p10, %s1074_s20), 3  ;;  %1205 = vmatpush3.bf16.msra.mxu0 %v1202_v17  ;;  %v846_v61 = vld [vmem:[%s1684_s6 + $0x18] sm:$0xff]  ;;  %v1234_v62 = vpack.c.bf16 %v754_v59, %v753_v58 }
  0x1b   : > { %s1506_s21 = sshll.u32 %s1707_s20, 3  ;;  %1221 = vmatpush3.bf16.msra.mxu1 %v1218_v20  ;;  %1207 = vmatprep.subr.bf16.mxu0 %v1206_v23  ;;  %v1242_v0 = vpack.c.bf16 %v846_v61, %v845_v60 }
  0x1c   : > { %s477_s24 = scalar_lea.vmem %s1698_s1, %s1506_s21  ;;  %s483_s16 = scalar_lea.vmem %s1699_s2, %s1506_s21  ;;  %1223 = vmatprep.subr.bf16.mxu1 %v1222_v26 }
  0x1d   : > { %v486_v1 = vld [vmem:[%s477_s24] sm:$0xff]  ;;  %v487_v2 = vld [vmem:[%s477_s24 + $0x8] sm:$0xff]  ;;  %s464_s24 = sand.u32 1, %s1372_s26  }
  0x1e   : > { %v1516_v3 = vld [vmem:[%s483_s16] sm:$0xff]  ;;  %1290 = vrcp.f32 %v486_v1  ;;  %v1519_v4 = vld [vmem:[%s483_s16 + $0x8] sm:$0xff]  ;;  %vm488_vm0 = vcmp.gt.f32.partialorder %v486_v1, 0.0  ;;  %vm489_vm1 = vcmp.gt.f32.partialorder %v487_v2, 0.0  ;;  %1209 = vmatpush3.bf16.msra.mxu0 %v1206_v23  ;;  %s1073_s30 = sshll.u32 %s464_s24, 4  ;;  %s1105_s16 = sshll.u32 %s1478_s29, 8 }
  0x1f   : > { %529 = vrot.lane.b32.xlu1 %v1516_v3, %s1383_s17  ;;  %1292 = vrcp.f32 %v487_v2  ;;  %1225 = vmatpush3.bf16.msra.mxu1 %v1222_v26  ;;  %v1082_v1 = vld [vmem:[%s1685_s7] ss:$0 sm:$0xff]  ;;  %s466_s20 = scalar_lea.vmem [#allocation3], %s1073_s30  ;;  %s1631_s2 = scalar_lea.hbm %s1691_s13, %s1105_s16 }
  0x20   : > { %1211 = vmatprep.subr.bf16.mxu0 %v1210_v29  ;;  %1227 = vmatprep.subr.bf16.mxu1 %v1226_v32  ;;  %v1095_v26 = vld [vmem:[%s1688_s10] ss:$0 sm:$0xff]  ;;  %s983_s22 = sshll.u32 %s466_s20, 4  ;;  %s1637_s29 = scalar_lea.sflag [#allocation4], %s464_s24  ;;  %s1633_s22 = int_to_ptr.vmem [resolvable:$true] %s983_s22 }
  0x21   : > { %s1318_s30 = scalar_lea.vmem %s1633_s22, 256 }
  0x22   : > { %1213 = vmatpush3.bf16.msra.mxu0 %v1210_v29  ;;  %p1319_p11 = scmp.ne.s32.totalorder %s1633_s22, %s1318_s30 }
  0x23   : > { %531 = vrot.lane.b32.xlu1 %v1519_v4, %s1383_s17  ;;  %1229 = vmatpush3.bf16.msra.mxu1 %v1226_v32  ;;  %s471_s17 = scalar_lea.vmem %s1700_s0, %s1506_s21  ;;  %s1384_s0 = smov [#allocation3]  }
  0x24   : > { %1231 = vmatprep.subr.bf16.mxu0 %v1230_v35  ;;  %1239 = vmatprep.subr.bf16.mxu1 %v1238_v38  ;;  %v496_v39 = vld [vmem:[%s471_s17] sm:$0xff]  ;;  %v497_v42 = vld [vmem:[%s471_s17 + $0x8] sm:$0xff]  ;;  %p1320_p12 = pnand %p1319_p11, %p1495_p5  ;;  %s1322_s15 = sshll.u32 %s1384_s0, 4  ;;  %s1323_s15 = int_to_ptr.vmem [resolvable:$false] %s1322_s15 }
  0x25   : > { %s1324_s17 = scalar_lea.vmem %s1323_s15, 512  ;;  %p1325_p0 = scmp.lt.s32.totalorder %s1633_s22, %s1323_s15 }
  0x26   : > { %p1321_p13 = pneg %p1320_p12  ;;  %p1326_p1 = scmp.lt.s32.totalorder %s1324_s17, %s1318_s30 }
  0x28   : > { %v1291_v5 = vpop.eup %1290  ;;  %p1327_p2 = por %p1326_p1, %p1325_p0 }
  0x29   : > { %v1293_v6 = vpop.eup %1292  ;;  %v494_v7 = vsel %vm488_vm0, %v1291_v5, 0.0 }
  0x2a   : > { %500 = vperm.xlu0 %1289, %v494_v7   ;;  %v495_v8 = vsel %vm489_vm1, %v1293_v6, 0.0  ;;  %v1087_v7 = vld [vmem:[%s1686_s8] ss:$0 sm:$0xff]  ;;  %p1328_p3 = pnand %p1327_p2, %p1321_p13 }
  0x2e   : > { %505 = vperm.xlu0 %1289, %v495_v8  }
  0x91   : > { %v530_v50 = vpop.permute.xlu1 %529 }
  0x95   : > { %v532_v55 = vpop.permute.xlu1 %531 }
  0xa9   : > { %v501_v40 = vpop.permute.xlu0 %500 }
  0xaa   : > { %v508_v41 = vmul.f32 %v501_v40, %v496_v39 }
  0xac   : > { %v512_v43 = vmin.f32 %v508_v41, 0.0  ;;  %vm510_vm3 = vcmp.gt.f32.partialorder %v508_v41, 0.0 }
  0xad   : > { %v506_v44 = vpop.permute.xlu0 %505 }
  0xae   : > { %v514_v45 = vmul.f32 1.442695, %v512_v43  ;;  %v509_v46 = vmul.f32 %v506_v44, %v497_v42 }
  0xb0   : > { %1294 = vpow2.f32 %v514_v45  ;;  %v513_v47 = vmin.f32 %v509_v46, 0.0  ;;  %vm511_vm5 = vcmp.gt.f32.partialorder %v509_v46, 0.0 }
  0xb2   : > { %v516_v48 = vmul.f32 1.442695, %v513_v47 }
  0xb4   : > { %1296 = vpow2.f32 %v516_v48 }
  0xba   : > { %v1295_v49 = vpop.eup %1294 }
  0xbb   : > { %v1080_v51 = vadd.f32 -1.0, %v1295_v49 }
  0xbd   : > { %v520_v52 = vsel %vm510_vm3, %v508_v41, %v1080_v51 }
  0xbe   : > { %v1297_v53 = vpop.eup %1296  ;;  %525 = vst.msk [vmem:[#allocation2] sm:$0xff] %vm524_vm2, %v520_v52 }
  0xbf   : > { %v1081_v54 = vadd.f32 -1.0, %v1297_v53  ;;  %536 = vst.msk [vmem:[#allocation2] sm:$0xff] %vm535_vm4, %v530_v50 }
  0xc1   : > { %v521_v56 = vsel %vm511_vm5, %v509_v46, %v1081_v54 }
  0xc2   : > { %526 = vst.msk [vmem:[#allocation2 + $0x8] sm:$0xff] %vm524_vm2, %v521_v56 }
  0xc3   : > { %537 = vst.msk [vmem:[#allocation2 + $0x8] sm:$0xff] %vm535_vm4, %v532_v55  ;;  %v1099_v55 = vld [vmem:[%s1690_s12] ss:$0 sm:$0xff] }
  0xc6   : > { %v538_v57 = vld [vmem:[#allocation2] sm:$0xff] }
  0xc7   : > { %1154 = vmatprep.mubr.msk.f32.mxu0 %vm555_vm6, %v538_v57  ;;  %1173 = vmatprep.mubr.msk.f32.mxu1 %vm555_vm6, %v538_v57 }
  0xca   : > { %v539_v63 = vld [vmem:[#allocation2 + $0x8] sm:$0xff] }
  0xcb   : > { %1155 = vmatmul.mubr.msk.f32.vlgmr.msra.gmra.mrb[0].mxu0 %vm555_vm6, %v539_v63  ;;  %1174 = vmatmul.mubr.msk.f32.vlgmr.msra.gmra.mrb[0].mxu1 %vm555_vm6, %v539_v63 }
  0xcc   : > { %1233 = vmatpush3.bf16.msra.mxu0 %v1230_v35  ;;  %1184 = vmatprep.mubr.msk.f32.mxu0 %vm524_vm2, %v520_v52  ;;  %v1098_v52 = vld [vmem:[%s1689_s11] ss:$0 sm:$0xff] }
  0xcd   : > { %1235 = vmatprep.subr.bf16.mxu0 %v1234_v62  ;;  %1241 = vmatpush3.bf16.msra.mxu1 %v1238_v38 }
  0xce   : > { %1243 = vmatprep.subr.bf16.mxu1 %v1242_v0  ;;  %1195 = vmatprep.mubr.msk.f32.mxu1 %vm524_vm2, %v1516_v3 }
  0xd0   : > { %1237 = vmatpush3.bf16.msra.mxu0 %v1234_v62 }
  0xd1   : > { %1245 = vmatpush3.bf16.msra.mxu1 %v1242_v0 }
  0xd3   : > { %1185 = vmatmul.mubr.msk.f32.vlgmr.msra.gmra.mrb[2].mxu0 %vm524_vm2, %v521_v56 }
  0xd4   : > { %1196 = vmatmul.mubr.msk.f32.vlgmr.msra.gmra.mrb[2].mxu1 %vm524_vm2, %v1519_v4 }
 0x19e   : > { %v1156_v2 = vpop.f32.mrb[0].mxu0  ;;  %v1175_v5 = vpop.f32.mrb[0].mxu1 }
 0x19f   : > { %v634_v6 = vadd.f32 %v1156_v2, %v1082_v1  ;;  %v628_v8 = vpop.f32.mrb[1].mxu0  ;;  %v730_v9 = vpop.f32.mrb[1].mxu1  ;;  %v736_v12 = vadd.f32 %v1175_v5, %v1087_v7 }
 0x1a0   : > { %v629_v10 = vadd.f32 %v1082_v1, %v628_v8  ;;  %v731_v14 = vadd.f32 %v1087_v7, %v730_v9 }
 0x1a1   : > { %v1086_v11 = vmul.f32 -1.442695, %v634_v6  ;;  %v1091_v15 = vmul.f32 -1.442695, %v736_v12 }
 0x1a2   : > { %v1085_v13 = vmul.f32 -1.442695, %v629_v10  ;;  %v1090_v19 = vmul.f32 -1.442695, %v731_v14 }
 0x1a3   : > { %1298 = vpow2.f32 %v1086_v11 }
 0x1a4   : > { %1300 = vpow2.f32 %v1085_v13 }
 0x1a5   : > { %1302 = vpow2.f32 %v1091_v15 }
 0x1a6   : > { %v1186_v16 = vpop.f32.mrb[2].mxu0  ;;  %1304 = vpow2.f32 %v1090_v19 }
 0x1a7   : > { %v834_v17 = vpop.f32.mrb[3].mxu0  ;;  %v1197_v18 = vpop.f32.mrb[2].mxu1  ;;  %v840_v34 = vadd.f32 %v1186_v16, %v1092_v30 }
 0x1a8   : > { %v924_v20 = vpop.f32.mrb[3].mxu1  ;;  %v930_v29 = vadd.f32 %v1197_v18, %v1095_v26  ;;  %v835_v37 = vadd.f32 %v1092_v30, %v834_v17 }
 0x1a9   : > { %v925_v32 = vadd.f32 %v1095_v26, %v924_v20 }
 0x1ad   : > { %v1299_v21 = vpop.eup %1298 }
 0x1ae   : > { %v644_v22 = vadd.f32 1.0, %v1299_v21  ;;  %v1301_v23 = vpop.eup %1300 }
 0x1af   : > { %v643_v24 = vadd.f32 1.0, %v1301_v23  ;;  %v1303_v25 = vpop.eup %1302 }
 0x1b0   : > { %1306 = vrcp.f32 %v644_v22  ;;  %v1305_v27 = vpop.eup %1304  ;;  %v746_v28 = vadd.f32 1.0, %v1303_v25 }
 0x1b1   : > { %1308 = vrcp.f32 %v643_v24  ;;  %v745_v31 = vadd.f32 1.0, %v1305_v27 }
 0x1b2   : > { %1310 = vrcp.f32 %v746_v28 }
 0x1b3   : > { %1312 = vrcp.f32 %v745_v31 }
 0x1ba   : > { %v1307_v33 = vpop.eup %1306 }
 0x1bb   : > { %v934_v35 = vmul.f32 %v1307_v33, %v930_v29  ;;  %v1309_v36 = vpop.eup %1308 }
 0x1bc   : > { %v933_v39 = vmul.f32 %v1309_v36, %v925_v32  ;;  %v1311_v41 = vpop.eup %1310 }
 0x1bd   : > { %v936_v38 = vadd.f32 %v934_v35, %v840_v34  ;;  %v1313_v42 = vpop.eup %1312  ;;  %v940_v43 = vsub.f32 1.0, %v1311_v41  ;;  %v944_v45 = vmul.f32 %v1311_v41, %v1519_v4 }
 0x1be   : > { %v935_v40 = vadd.f32 %v933_v39, %v835_v37  ;;  %v939_v46 = vsub.f32 1.0, %v1313_v42  ;;  %v943_v49 = vmul.f32 %v1313_v42, %v1516_v3 }
 0x1bf   : > { %1314 = vtanh.f32 %v936_v38 }
 0x1c0   : > { %1316 = vtanh.f32 %v935_v40 }
 0x1c9   : > { %v1315_v44 = vpop.eup %1314 }
 0x1ca   : > { %v942_v47 = vmul.f32 %v1315_v44, %v940_v43  ;;  %v1317_v48 = vpop.eup %1316 }
 0x1cb   : > { %v941_v51 = vmul.f32 %v1317_v48, %v939_v46 }
 0x1cc   : > { %v946_v50 = vadd.f32 %v944_v45, %v942_v47 }
 0x1cd   : > { %v945_v54 = vadd.f32 %v943_v49, %v941_v51 }
 0x1ce   : > { %v948_v53 = vmax.f32 %v946_v50, 0.0 }
 0x1cf   : > { %v947_v4 = vmax.f32 %v945_v54, 0.0 }
 0x1d0   : > { %v957_v56 = vmul.f32 %v1098_v52, %v948_v53 }
 0x1d1   : > { %v956_v57 = vmul.f32 %v1098_v52, %v947_v4 }
 0x1d2   : > { %v966_v3 = vadd.f32 %v1099_v55, %v957_v56 }
 0x1d3   : > { %v965_v58 = vadd.f32 %v1099_v55, %v956_v57 }
 0x1d4   : > { %968 = vst.msk [vmem:[%s466_s20 + $0x8] sm:$0xff] %vm524_vm2, %v966_v3 }
 0x1d5   : > { %967 = vst.msk [vmem:[%s466_s20] sm:$0xff] %vm524_vm2, %v965_v58 }
 0x1d6   : > { %1331 = shalt.err (!%p1328_p3)
}
 0x1d7   : > { %s1332_s24 = scalar_lea.hbm %s1631_s2, 256  ;;  %s1336_s16 = scalar_lea.hbm %s1691_s13, 512 }
 0x1d8   : > { %p1333_p4 = scmp.ne.s32.totalorder %s1631_s2, %s1332_s24  ;;  %p1337_p9 = scmp.lt.u32.totalorder %s1631_s2, %s1691_s13 }
 0x1d9   : > { %p1338_p10 = scmp.lt.u32.totalorder %s1336_s16, %s1332_s24  ;;  %p1340_p12 = scmp.lt.u32.totalorder %s1332_s24, %s1631_s2 }
 0x1da   : > { %p1334_p7 = pnand %p1333_p4, %p1495_p5 }
 0x1db   : > { %p1339_p11 = por %p1338_p10, %p1337_p9 }
 0x1dc   : > { %p1335_p8 = pneg %p1334_p7 }
 0x1dd   : > { %p1341_p13 = por %p1340_p12, %p1339_p11 }
 0x1df   : > { %p1342_p0 = pnand %p1341_p13, %p1335_p8 }
 0x1e1   : > { %1345 = shalt.err (!%p1342_p0)
}
 0x1e2   : > { %s1385_s30 = smov 128   ;;  %s1386_s0 = smov 8  }
 0x1e3   : > { %1246 = dma.vmem_to_hbm [thread:$0]  (%p1495_p5), %s1633_s22, 256, %s1631_s2, %s1637_s29, %s1385_s30, %s1385_s30, %s1386_s0  }
 0x1e4 PF: > { %p1252_p1 = scmp.ge.s32.totalorder %s1380_s28, 2  ;;  %s998_s15 = sand.u32 1, %s1368_s25  }
 0x1e5   : > { %s999_s17 = scalar_lea.sflag [#allocation4], %s998_s15 }
 0x1e6   : > { %p1249_p2 = pnand %p1252_p1, %p1499_p6 }
 0x1e8   : > { %1363 = dma.done.wait (!%p1249_p2), %s999_s17, 256  }
 0x1e9   : > { %1365 = vsyncadd (!%p1249_p2), %s999_s17, 4294967040  ;;  %s1701_s24 = sld [smem:[#allocation6_spill]]  ;;  %p23_p3 = scmp.ge.s32.totalorder %s1482_s14, 4  }
 0x1ea   : > { %s1702_s25 = smov %s1372_s26  ;;  %s1703_s26 = smov %s1376_s27 }
 0x1eb   : > { %s1705_s28 = smov %s1482_s14  ;;  %25 = sbr.rel (!%p23_p3) target bundleno = 7 (0x7), region = 113 }
 0x1ef   : > { %s1704_s27 = smov %s1701_s24 }
 0x1f2   :  { %1004 = vsyncpa [#allocation4], 1 }
 0x1f3   :  { %1006 = vsyncpa [#allocation4 + $0x1], 1 }

</bundles_post_ra>
